<compile_context>
chip_gen: v7x
topology: tpu7x:2x2x1
jax: 0.10.0
libtpu: 0.0.40
codegen_flags: <defaults>
</compile_context>

<pallas_src>
import functools

import jax
import jax.numpy as jnp
from jax import lax
from jax.experimental import pallas as pl
from jax.experimental.pallas import tpu as pltpu


# -----------------------------------------------------------------------------
# Fused kernel: all encoder blocks, whole batch per grid step.
#   grid = (num_layers,)       (sequential: x is carried in VMEM scratch)
#   per-layer weights are streamed (double-buffered) by the BlockSpec pipeline.
# -----------------------------------------------------------------------------
def _bert_encoder_kernel(x0_ref, mask_ref,
                         wqkv_ref, bqkv_ref, wo_ref, bo_ref,
                         g1_ref, be1_ref, w1_ref, b1_ref,
                         w2_ref, b2_ref, g2_ref, be2_ref,
                         out_ref, x_scr, *, num_heads, batch, seq):
    l = pl.program_id(0)
    nh = num_heads
    B, S = batch, seq
    T, H = x_scr.shape
    dh = H // nh
    G = nh * B                      # flattened (head, batch) group, g = h*B + b

    # layer 0: initialise the resident activation with the embedding sum
    @pl.when(l == 0)
    def _():
        x_scr[...] = x0_ref[...]

    x = x_scr[...]                                          # (T, H) f32 carry

    # ----------------- multi-head self-attention -----------------
    # single batched einsum for Q, K and V over the (qkv, head, batch) axis
    xb = x.astype(jnp.bfloat16).reshape(B, S, H)
    x_g = jnp.broadcast_to(xb[None], (nh, B, S, H)).reshape(G, S, H)
    x_g3 = jnp.broadcast_to(x_g[None], (3, G, S, H)).reshape(3 * G, S, H)

    w = wqkv_ref[0]                                         # (3*nh, H, dh) bf16
    w_g = jnp.broadcast_to(w[:, None], (3 * nh, B, H, dh)).reshape(3 * G, H, dh)
    bqkv = bqkv_ref[0]                                      # (3*nh, 1, dh) f32
    b_g = jnp.broadcast_to(bqkv[:, None], (3 * nh, B, 1, dh)).reshape(3 * G, 1, dh)

    qkv = jnp.einsum('gsh,ghd->gsd', x_g3, w_g,
                     preferred_element_type=jnp.float32) + b_g   # (3G, S, dh)
    q = qkv[0:G]
    k = qkv[G:2 * G]
    v = qkv[2 * G:3 * G]

    scale = 1.0 / jnp.sqrt(jnp.float32(dh))
    s = jnp.einsum('gqd,gkd->gqk', q.astype(jnp.bfloat16),
                   k.astype(jnp.bfloat16),
                   preferred_element_type=jnp.float32) * scale   # (G, S, S)
    # d2l masked_softmax: keys at index >= valid_len get -1e6
    s = jnp.where(mask_ref[...] > 0.5, s, jnp.float32(-1e6))
    s = s - jnp.max(s, axis=-1, keepdims=True)
    p = jnp.exp(s)
    p = p * pl.reciprocal(jnp.sum(p, axis=-1, keepdims=True), approx=True)

    ctx = jnp.einsum('gqk,gkd->gqd', p.astype(jnp.bfloat16),
                     v.astype(jnp.bfloat16),
                     preferred_element_type=jnp.float32)          # (G, S, dh)

    # output projection: per-head matmul then sum over heads  (== concat @ Wo)
    wo = wo_ref[0]                                          # (nh, dh, H) bf16
    wo_g = jnp.broadcast_to(wo[:, None], (nh, B, dh, H)).reshape(G, dh, H)
    attn = jnp.einsum('gsd,gdh->gsh', ctx.astype(jnp.bfloat16), wo_g,
                      preferred_element_type=jnp.float32)         # (G, S, H)
    attn = attn.reshape(nh, B, S, H).sum(axis=0).reshape(T, H) + bo_ref[0]

    def layer_norm(z, g, be):
        mu = jnp.mean(z, axis=-1, keepdims=True)
        var = jnp.mean(jnp.square(z - mu), axis=-1, keepdims=True)
        return (z - mu) * lax.rsqrt(var + jnp.float32(1e-5)) * g + be

    # TODO(synk): dropout layers omitted (p = 0 / eval mode => identity).
    y = layer_norm(x + attn, g1_ref[0], be1_ref[0])               # (T, H) f32

    # ----------------- position-wise FFN -----------------
    h1 = jnp.maximum(
        jnp.dot(y.astype(jnp.bfloat16), w1_ref[0],
                preferred_element_type=jnp.float32) + b1_ref[0], 0.0)
    f = jnp.dot(h1.astype(jnp.bfloat16), w2_ref[0],
                preferred_element_type=jnp.float32) + b2_ref[0]

    out = layer_norm(y + f, g2_ref[0], be2_ref[0])

    x_scr[...] = out                                         # carry to next layer

    @pl.when(l == pl.num_programs(0) - 1)
    def _():
        out_ref[...] = out


def _resident_spec(shape):
    n = len(shape)
    return pl.BlockSpec(shape, lambda l, _n=n: (0,) * _n)


def _layer_spec(shape):
    n = len(shape)
    return pl.BlockSpec((1,) + shape, lambda l, _n=n: (l,) + (0,) * _n)


# -----------------------------------------------------------------------------
# Parameter construction + full forward (glue in plain JAX)
# -----------------------------------------------------------------------------
def init_params(key, vocab_size, H, Fh, num_layers, max_len):
    keys = jax.random.split(key, 3 + num_layers)
    params = {
        "token_embedding": jax.random.normal(keys[0], (vocab_size, H), jnp.float32),
        "segment_embedding": jax.random.normal(keys[1], (2, H), jnp.float32),
        "pos_embedding": jax.random.normal(keys[2], (1, max_len, H), jnp.float32),
        "layers": [],
    }
    for i in range(num_layers):
        lk = jax.random.split(keys[3 + i], 6)
        sc = 0.02
        layer = {
            "wq": sc * jax.random.normal(lk[0], (H, H), jnp.float32),
            "bq": jnp.zeros((1, H), jnp.float32),
            "wk": sc * jax.random.normal(lk[1], (H, H), jnp.float32),
            "bk": jnp.zeros((1, H), jnp.float32),
            "wv": sc * jax.random.normal(lk[2], (H, H), jnp.float32),
            "bv": jnp.zeros((1, H), jnp.float32),
            "wo": sc * jax.random.normal(lk[3], (H, H), jnp.float32),
            "bo": jnp.zeros((1, H), jnp.float32),
            "g1": jnp.ones((1, H), jnp.float32),
            "be1": jnp.zeros((1, H), jnp.float32),
            "w1": sc * jax.random.normal(lk[4], (H, Fh), jnp.float32),
            "b1": jnp.zeros((1, Fh), jnp.float32),
            "w2": sc * jax.random.normal(lk[5], (Fh, H), jnp.float32),
            "b2": jnp.zeros((1, H), jnp.float32),
            "g2": jnp.ones((1, H), jnp.float32),
            "be2": jnp.zeros((1, H), jnp.float32),
        }
        params["layers"].append(layer)
    return params


@functools.partial(jax.jit, static_argnames=("num_heads",))
def bert_encoder_forward(params, tokens, segments, valid_lens, *, num_heads):
    B, S = tokens.shape
    H = params["token_embedding"].shape[1]
    L = len(params["layers"])
    nh = num_heads
    dh = H // nh
    Fh = params["layers"][0]["w1"].shape[1]
    T = B * S
    G = nh * B

    # Embedding lookups + 3-way add: left to XLA (fuses with the gathers); a
    # dedicated Pallas elementwise kernel here was pure launch overhead.
    x0 = (params["token_embedding"][tokens]
          + params["segment_embedding"][segments]
          + params["pos_embedding"][:, :S, :]).astype(jnp.float32).reshape(T, H)

    # key-validity mask, pre-broadcast to the (head, batch) group layout
    mask = (jnp.arange(S, dtype=jnp.int32)[None, :]
            < valid_lens.astype(jnp.int32)[:, None]).astype(jnp.float32)   # (B,S)
    mask_g = jnp.broadcast_to(mask[None], (nh, B, S)).reshape(G, S)[:, None, :]

    # ---- stack per-layer params along a leading layer axis (bf16 matmul
    #      operands, f32 biases / norm params) ----
    def stack(name):
        return jnp.stack([lyr[name] for lyr in params["layers"]], axis=0)

    def split_w(w):   # (L, H, H) -> (L, nh, H, dh): per-head output columns
        return w.reshape(L, H, nh, dh).transpose(0, 2, 1, 3)

    def split_b(b):   # (L, 1, H) -> (L, nh, 1, dh)
        return b.reshape(L, 1, nh, dh).transpose(0, 2, 1, 3)

    wqkv = jnp.concatenate(
        [split_w(stack("wq")), split_w(stack("wk")), split_w(stack("wv"))],
        axis=1).astype(jnp.bfloat16)                          # (L, 3*nh, H, dh)
    bqkv = jnp.concatenate(
        [split_b(stack("bq")), split_b(stack("bk")), split_b(stack("bv"))],
        axis=1).astype(jnp.float32)                           # (L, 3*nh, 1, dh)
    wo = stack("wo").reshape(L, nh, dh, H).astype(jnp.bfloat16)  # per-head rows
    w1 = stack("w1").astype(jnp.bfloat16)                     # (L, H, Fh)
    w2 = stack("w2").astype(jnp.bfloat16)                     # (L, Fh, H)
    bo, g1, be1, b1, b2, g2, be2 = (
        stack(n).astype(jnp.float32)
        for n in ("bo", "g1", "be1", "b1", "b2", "g2", "be2"))

    kernel = functools.partial(_bert_encoder_kernel,
                               num_heads=nh, batch=B, seq=S)

    out = pl.pallas_call(
        kernel,
        out_shape=jax.ShapeDtypeStruct((T, H), jnp.float32),
        grid_spec=pltpu.PrefetchScalarGridSpec(
            num_scalar_prefetch=0,
            grid=(L,),
            in_specs=[
                _resident_spec((T, H)),         # x0 (embedding sum)
                _resident_spec((G, 1, S)),      # key mask per (head, batch)
                _layer_spec((3 * nh, H, dh)),   # wqkv
                _layer_spec((3 * nh, 1, dh)),   # bqkv
                _layer_spec((nh, dh, H)),       # wo (per-head)
                _layer_spec((1, H)),            # bo
                _layer_spec((1, H)),            # gamma1
                _layer_spec((1, H)),            # beta1
                _layer_spec((H, Fh)),           # w1
                _layer_spec((1, Fh)),           # b1
                _layer_spec((Fh, H)),           # w2
                _layer_spec((1, H)),            # b2
                _layer_spec((1, H)),            # gamma2
                _layer_spec((1, H)),            # beta2
            ],
            out_specs=pl.BlockSpec((T, H), lambda l: (0, 0)),
            scratch_shapes=[pltpu.VMEM((T, H), jnp.float32)],   # resident x carry
        ),
        compiler_params=pltpu.CompilerParams(
            # the only grid axis is the layer axis, which carries x -> sequential
            dimension_semantics=("arbitrary",)),
    )(x0, mask_g, wqkv, bqkv, wo, bo, g1, be1, w1, b1, w2, b2, g2, be2)

    return out.reshape(B, S, H)


if __name__ == "__main__":
    vocab_size = 100
    num_hiddens = 32          # H
    ffn_num_hiddens = 64
    num_heads = 2
    num_layers = 2
    max_len = 1000
    B, S = 2, 8

    key = jax.random.PRNGKey(0)
    kp, kt = jax.random.split(key)

    params = init_params(kp, vocab_size, num_hiddens, ffn_num_hiddens,
                         num_layers, max_len)

    tokens = jax.random.randint(kt, (B, S), 0, vocab_size, dtype=jnp.int32)
    segments = jnp.array([[0, 0, 0, 0, 1, 1, 1, 1],
                          [0, 0, 0, 1, 1, 1, 1, 1]], dtype=jnp.int32)
    valid_lens = jnp.array([8, 6], dtype=jnp.int32)

    out = bert_encoder_forward(params, tokens, segments, valid_lens,
                               num_heads=num_heads)
    out = jax.block_until_ready(out)
    assert out.shape == (B, S, num_hiddens)
    assert bool(jnp.all(jnp.isfinite(out)))
    print("KERNEL_OK")
</pallas_src>

<mosaic_0001>
module attributes {stable_mosaic.version = 11 : i64} {
  func.func @_bert_encoder_kernel(%arg0: i32, %arg1: memref<16x32xf32, #tpu.memory_space<vmem>>, %arg2: memref<4x1x8xf32, #tpu.memory_space<vmem>>, %arg3: memref<1x6x32x16xbf16, #tpu.memory_space<vmem>>, %arg4: memref<1x6x1x16xf32, #tpu.memory_space<vmem>>, %arg5: memref<1x2x16x32xbf16, #tpu.memory_space<vmem>>, %arg6: memref<1x1x32xf32, #tpu.memory_space<vmem>>, %arg7: memref<1x1x32xf32, #tpu.memory_space<vmem>>, %arg8: memref<1x1x32xf32, #tpu.memory_space<vmem>>, %arg9: memref<1x32x64xbf16, #tpu.memory_space<vmem>>, %arg10: memref<1x1x64xf32, #tpu.memory_space<vmem>>, %arg11: memref<1x64x32xbf16, #tpu.memory_space<vmem>>, %arg12: memref<1x1x32xf32, #tpu.memory_space<vmem>>, %arg13: memref<1x1x32xf32, #tpu.memory_space<vmem>>, %arg14: memref<1x1x32xf32, #tpu.memory_space<vmem>>, %arg15: memref<16x32xf32, #tpu.memory_space<vmem>>, %arg16: memref<16x32xf32, #tpu.memory_space<vmem>>) attributes {dimension_semantics = [#tpu.dimension_semantics<arbitrary>], iteration_bounds = array<i64: 2>, scalar_prefetch = 0 : i64, scratch_operands = 1 : i64, tpu.core_type = #tpu.core_type<tc>, window_params = [{pipeline_mode = #tpu.pipeline_mode<synchronous>, transform_indices = @transform_0, window_bounds = array<i64: 16, 32>}, {pipeline_mode = #tpu.pipeline_mode<synchronous>, transform_indices = @transform_1, window_bounds = array<i64: 4, 1, 8>}, {transform_indices = @transform_2, window_bounds = array<i64: 1, 6, 32, 16>}, {transform_indices = @transform_3, window_bounds = array<i64: 1, 6, 1, 16>}, {transform_indices = @transform_4, window_bounds = array<i64: 1, 2, 16, 32>}, {transform_indices = @transform_5, window_bounds = array<i64: 1, 1, 32>}, {transform_indices = @transform_6, window_bounds = array<i64: 1, 1, 32>}, {transform_indices = @transform_7, window_bounds = array<i64: 1, 1, 32>}, {transform_indices = @transform_8, window_bounds = array<i64: 1, 32, 64>}, {transform_indices = @transform_9, window_bounds = array<i64: 1, 1, 64>}, {transform_indices = @transform_10, window_bounds = array<i64: 1, 64, 32>}, {transform_indices = @transform_11, window_bounds = array<i64: 1, 1, 32>}, {transform_indices = @transform_12, window_bounds = array<i64: 1, 1, 32>}, {transform_indices = @transform_13, window_bounds = array<i64: 1, 1, 32>}, {pipeline_mode = #tpu.pipeline_mode<synchronous>, transform_indices = @transform_14, window_bounds = array<i64: 16, 32>}]} {
    %c0_i32 = arith.constant 0 : i32
    %0 = arith.cmpi eq, %arg0, %c0_i32 : i32
    %1 = arith.extui %0 : i1 to i32
    %c0_i32_0 = arith.constant 0 : i32
    %2 = arith.cmpi ne, %1, %c0_i32_0 : i32
    scf.if %2 {
      %c0_70 = arith.constant 0 : index
      %c0_71 = arith.constant 0 : index
      %150 = vector.load %arg1[%c0_70, %c0_71] : memref<16x32xf32, #tpu.memory_space<vmem>>, vector<16x32xf32>
      %c0_72 = arith.constant 0 : index
      %c0_73 = arith.constant 0 : index
      %151 = vector.load %arg16[%c0_72, %c0_73] : memref<16x32xf32, #tpu.memory_space<vmem>>, vector<16x32xf32>
      tpu.vector_store %arg16[%c0_72, %c0_73], %150 {strides = array<i32>} : memref<16x32xf32, #tpu.memory_space<vmem>>, vector<16x32xf32>,
    } else {
    }
    %c0 = arith.constant 0 : index
    %c0_1 = arith.constant 0 : index
    %3 = vector.load %arg16[%c0, %c0_1] : memref<16x32xf32, #tpu.memory_space<vmem>>, vector<16x32xf32>
    %4 = arith.truncf %3 : vector<16x32xf32> to vector<16x32xbf16>
    %5 = vector.shape_cast %4 : vector<16x32xbf16> to vector<2x8x32xbf16>
    %6 = vector.shape_cast %5 : vector<2x8x32xbf16> to vector<1x2x8x32xbf16>
    %7 = vector.shape_cast %6 : vector<1x2x8x32xbf16> to vector<1x2x8x32xbf16>
    %8 = vector.broadcast %7 : vector<1x2x8x32xbf16> to vector<2x2x8x32xbf16>
    %9 = vector.shape_cast %8 : vector<2x2x8x32xbf16> to vector<4x8x32xbf16>
    %10 = vector.shape_cast %9 : vector<4x8x32xbf16> to vector<1x4x8x32xbf16>
    %11 = vector.shape_cast %10 : vector<1x4x8x32xbf16> to vector<1x4x8x32xbf16>
    %12 = vector.broadcast %11 : vector<1x4x8x32xbf16> to vector<3x4x8x32xbf16>
    %13 = vector.shape_cast %12 : vector<3x4x8x32xbf16> to vector<12x8x32xbf16>
    %c0_2 = arith.constant 0 : index
    %c0_3 = arith.constant 0 : index
    %c0_4 = arith.constant 0 : index
    %c0_5 = arith.constant 0 : index
    %14 = vector.load %arg3[%c0_2, %c0_3, %c0_4, %c0_5] : memref<1x6x32x16xbf16, #tpu.memory_space<vmem>>, vector<1x6x32x16xbf16>
    %15 = vector.shape_cast %14 : vector<1x6x32x16xbf16> to vector<6x32x16xbf16>
    %16 = vector.shape_cast %15 : vector<6x32x16xbf16> to vector<6x1x32x16xbf16>
    %17 = vector.shape_cast %16 : vector<6x1x32x16xbf16> to vector<6x1x32x16xbf16>
    %18 = vector.broadcast %17 : vector<6x1x32x16xbf16> to vector<6x2x32x16xbf16>
    %19 = vector.shape_cast %18 : vector<6x2x32x16xbf16> to vector<12x32x16xbf16>
    %c0_6 = arith.constant 0 : index
    %c0_7 = arith.constant 0 : index
    %c0_8 = arith.constant 0 : index
    %c0_9 = arith.constant 0 : index
    %20 = vector.load %arg4[%c0_6, %c0_7, %c0_8, %c0_9] : memref<1x6x1x16xf32, #tpu.memory_space<vmem>>, vector<1x6x1x16xf32>
    %21 = vector.shape_cast %20 : vector<1x6x1x16xf32> to vector<6x1x16xf32>
    %22 = vector.shape_cast %21 : vector<6x1x16xf32> to vector<6x1x1x16xf32>
    %23 = vector.shape_cast %22 : vector<6x1x1x16xf32> to vector<6x1x1x16xf32>
    %24 = vector.broadcast %23 : vector<6x1x1x16xf32> to vector<6x2x1x16xf32>
    %25 = vector.shape_cast %24 : vector<6x2x1x16xf32> to vector<12x1x16xf32>
    "tpu.trace_start"() <{level = 10 : i32, message = "gsh,ghd->gsd"}> : () -> ()
    %cst = arith.constant dense<0.000000e+00> : vector<12x8x16xf32>
    %26 = tpu.matmul %13, %19, %cst {dimension_numbers = #tpu.dot_dimension_numbers<[2], [1], [1], [2], [0, 0, 0, 1, 1, 2], [0], [0]>} : vector<12x8x32xbf16>, vector<12x32x16xbf16>, vector<12x8x16xf32> -> vector<12x8x16xf32>
    "tpu.trace_stop"() : () -> ()
    %27 = vector.broadcast %25 : vector<12x1x16xf32> to vector<12x8x16xf32>
    %28 = arith.addf %26, %27 : vector<12x8x16xf32>
    %29 = vector.extract_strided_slice %28 {offsets = [0, 0, 0], sizes = [4, 8, 16], strides = [1, 1, 1]} : vector<12x8x16xf32> to vector<4x8x16xf32>
    %30 = vector.extract_strided_slice %28 {offsets = [4, 0, 0], sizes = [4, 8, 16], strides = [1, 1, 1]} : vector<12x8x16xf32> to vector<4x8x16xf32>
    %31 = vector.extract_strided_slice %28 {offsets = [8, 0, 0], sizes = [4, 8, 16], strides = [1, 1, 1]} : vector<12x8x16xf32> to vector<4x8x16xf32>
    %cst_10 = arith.constant 1.600000e+01 : f32
    %32 = math.sqrt %cst_10 : f32
    %cst_11 = arith.constant 1.000000e+00 : f32
    %33 = arith.divf %cst_11, %32 : f32
    %34 = arith.truncf %29 : vector<4x8x16xf32> to vector<4x8x16xbf16>
    %35 = arith.truncf %30 : vector<4x8x16xf32> to vector<4x8x16xbf16>
    "tpu.trace_start"() <{level = 10 : i32, message = "gqd,gkd->gqk"}> : () -> ()
    %cst_12 = arith.constant dense<0.000000e+00> : vector<4x8x8xf32>
    %36 = tpu.matmul %34, %35, %cst_12 {dimension_numbers = #tpu.dot_dimension_numbers<[2], [2], [1], [1], [0, 0, 0, 1, 1, 1], [0], [0]>} : vector<4x8x16xbf16>, vector<4x8x16xbf16>, vector<4x8x8xf32> -> vector<4x8x8xf32>
    "tpu.trace_stop"() : () -> ()
    %37 = vector.broadcast %33 : f32 to vector<4x8x8xf32>
    %38 = arith.mulf %36, %37 : vector<4x8x8xf32>
    %c0_13 = arith.constant 0 : index
    %c0_14 = arith.constant 0 : index
    %c0_15 = arith.constant 0 : index
    %39 = vector.load %arg2[%c0_13, %c0_14, %c0_15] : memref<4x1x8xf32, #tpu.memory_space<vmem>>, vector<4x1x8xf32>
    %cst_16 = arith.constant 5.000000e-01 : f32
    %40 = vector.broadcast %cst_16 : f32 to vector<4x1x8xf32>
    %41 = arith.cmpf ogt, %39, %40 : vector<4x1x8xf32>
    %cst_17 = arith.constant -1.000000e+06 : f32
    %42 = vector.shape_cast %41 : vector<4x1x8xi1> to vector<4x1x8xi1>
    %43 = vector.broadcast %42 : vector<4x1x8xi1> to vector<4x8x8xi1>
    %44 = vector.broadcast %cst_17 : f32 to vector<4x8x8xf32>
    %45 = arith.select %43, %38, %44 : vector<4x8x8xi1>, vector<4x8x8xf32>
    %cst_18 = arith.constant dense<0xFF800000> : vector<4x8xf32>
    %46 = vector.multi_reduction <maximumf>, %45, %cst_18 [2] : vector<4x8x8xf32> to vector<4x8xf32>
    %47 = vector.shape_cast %46 : vector<4x8xf32> to vector<4x8x1xf32>
    %48 = vector.broadcast %47 : vector<4x8x1xf32> to vector<4x8x8xf32>
    %49 = arith.subf %45, %48 : vector<4x8x8xf32>
    %50 = math.exp %49 : vector<4x8x8xf32>
    %cst_19 = arith.constant dense<0.000000e+00> : vector<4x8xf32>
    %51 = vector.multi_reduction <add>, %50, %cst_19 [2] : vector<4x8x8xf32> to vector<4x8xf32>
    %52 = vector.shape_cast %51 : vector<4x8xf32> to vector<4x8x1xf32>
    %53 = tpu.reciprocal %52 {approx = true} : vector<4x8x1xf32> -> vector<4x8x1xf32>
    %54 = vector.broadcast %53 : vector<4x8x1xf32> to vector<4x8x8xf32>
    %55 = arith.mulf %50, %54 : vector<4x8x8xf32>
    %56 = arith.truncf %55 : vector<4x8x8xf32> to vector<4x8x8xbf16>
    %57 = arith.truncf %31 : vector<4x8x16xf32> to vector<4x8x16xbf16>
    "tpu.trace_start"() <{level = 10 : i32, message = "gqk,gkd->gqd"}> : () -> ()
    %cst_20 = arith.constant dense<0.000000e+00> : vector<4x8x16xf32>
    %58 = tpu.matmul %56, %57, %cst_20 {dimension_numbers = #tpu.dot_dimension_numbers<[2], [1], [1], [2], [0, 0, 0, 1, 1, 2], [0], [0]>} : vector<4x8x8xbf16>, vector<4x8x16xbf16>, vector<4x8x16xf32> -> vector<4x8x16xf32>
    "tpu.trace_stop"() : () -> ()
    %c0_21 = arith.constant 0 : index
    %c0_22 = arith.constant 0 : index
    %c0_23 = arith.constant 0 : index
    %c0_24 = arith.constant 0 : index
    %59 = vector.load %arg5[%c0_21, %c0_22, %c0_23, %c0_24] : memref<1x2x16x32xbf16, #tpu.memory_space<vmem>>, vector<1x2x16x32xbf16>
    %60 = vector.shape_cast %59 : vector<1x2x16x32xbf16> to vector<2x16x32xbf16>
    %61 = vector.shape_cast %60 : vector<2x16x32xbf16> to vector<2x1x16x32xbf16>
    %62 = vector.shape_cast %61 : vector<2x1x16x32xbf16> to vector<2x1x16x32xbf16>
    %63 = vector.broadcast %62 : vector<2x1x16x32xbf16> to vector<2x2x16x32xbf16>
    %64 = vector.shape_cast %63 : vector<2x2x16x32xbf16> to vector<4x16x32xbf16>
    %65 = arith.truncf %58 : vector<4x8x16xf32> to vector<4x8x16xbf16>
    "tpu.trace_start"() <{level = 10 : i32, message = "gsd,gdh->gsh"}> : () -> ()
    %cst_25 = arith.constant dense<0.000000e+00> : vector<4x8x32xf32>
    %66 = tpu.matmul %65, %64, %cst_25 {dimension_numbers = #tpu.dot_dimension_numbers<[2], [1], [1], [2], [0, 0, 0, 1, 1, 2], [0], [0]>} : vector<4x8x16xbf16>, vector<4x16x32xbf16>, vector<4x8x32xf32> -> vector<4x8x32xf32>
    "tpu.trace_stop"() : () -> ()
    %67 = vector.shape_cast %66 : vector<4x8x32xf32> to vector<2x2x8x32xf32>
    %cst_26 = arith.constant dense<0.000000e+00> : vector<2x8x32xf32>
    %68 = vector.multi_reduction <add>, %67, %cst_26 [0] : vector<2x2x8x32xf32> to vector<2x8x32xf32>
    %69 = vector.shape_cast %68 : vector<2x8x32xf32> to vector<16x32xf32>
    %c0_27 = arith.constant 0 : index
    %c0_28 = arith.constant 0 : index
    %c0_29 = arith.constant 0 : index
    %70 = vector.load %arg6[%c0_27, %c0_28, %c0_29] : memref<1x1x32xf32, #tpu.memory_space<vmem>>, vector<1x1x32xf32>
    %71 = vector.shape_cast %70 : vector<1x1x32xf32> to vector<1x32xf32>
    %72 = vector.broadcast %71 : vector<1x32xf32> to vector<16x32xf32>
    %73 = arith.addf %69, %72 : vector<16x32xf32>
    %74 = arith.addf %3, %73 : vector<16x32xf32>
    %c0_30 = arith.constant 0 : index
    %c0_31 = arith.constant 0 : index
    %c0_32 = arith.constant 0 : index
    %75 = vector.load %arg7[%c0_30, %c0_31, %c0_32] : memref<1x1x32xf32, #tpu.memory_space<vmem>>, vector<1x1x32xf32>
    %76 = vector.shape_cast %75 : vector<1x1x32xf32> to vector<1x32xf32>
    %c0_33 = arith.constant 0 : index
    %c0_34 = arith.constant 0 : index
    %c0_35 = arith.constant 0 : index
    %77 = vector.load %arg8[%c0_33, %c0_34, %c0_35] : memref<1x1x32xf32, #tpu.memory_space<vmem>>, vector<1x1x32xf32>
    %78 = vector.shape_cast %77 : vector<1x1x32xf32> to vector<1x32xf32>
    %cst_36 = arith.constant dense<0.000000e+00> : vector<16xf32>
    %79 = vector.multi_reduction <add>, %74, %cst_36 [1] : vector<16x32xf32> to vector<16xf32>
    %80 = vector.shape_cast %79 : vector<16xf32> to vector<16x1xf32>
    %cst_37 = arith.constant 3.200000e+01 : f32
    %81 = vector.broadcast %cst_37 : f32 to vector<16x1xf32>
    %82 = arith.divf %80, %81 : vector<16x1xf32>
    %83 = vector.broadcast %82 : vector<16x1xf32> to vector<16x32xf32>
    %84 = arith.subf %74, %83 : vector<16x32xf32>
    %85 = arith.mulf %84, %84 : vector<16x32xf32>
    %cst_38 = arith.constant dense<0.000000e+00> : vector<16xf32>
    %86 = vector.multi_reduction <add>, %85, %cst_38 [1] : vector<16x32xf32> to vector<16xf32>
    %87 = vector.shape_cast %86 : vector<16xf32> to vector<16x1xf32>
    %cst_39 = arith.constant 3.200000e+01 : f32
    %88 = vector.broadcast %cst_39 : f32 to vector<16x1xf32>
    %89 = arith.divf %87, %88 : vector<16x1xf32>
    %90 = vector.broadcast %82 : vector<16x1xf32> to vector<16x32xf32>
    %91 = arith.subf %74, %90 : vector<16x32xf32>
    %cst_40 = arith.constant 9.99999974E-6 : f32
    %92 = vector.broadcast %cst_40 : f32 to vector<16x1xf32>
    %93 = arith.addf %89, %92 : vector<16x1xf32>
    %94 = math.rsqrt %93 : vector<16x1xf32>
    %95 = vector.broadcast %94 : vector<16x1xf32> to vector<16x32xf32>
    %96 = arith.mulf %91, %95 : vector<16x32xf32>
    %97 = vector.broadcast %76 : vector<1x32xf32> to vector<16x32xf32>
    %98 = arith.mulf %96, %97 : vector<16x32xf32>
    %99 = vector.broadcast %78 : vector<1x32xf32> to vector<16x32xf32>
    %100 = arith.addf %98, %99 : vector<16x32xf32>
    %101 = arith.truncf %100 : vector<16x32xf32> to vector<16x32xbf16>
    %c0_41 = arith.constant 0 : index
    %c0_42 = arith.constant 0 : index
    %c0_43 = arith.constant 0 : index
    %102 = vector.load %arg9[%c0_41, %c0_42, %c0_43] : memref<1x32x64xbf16, #tpu.memory_space<vmem>>, vector<1x32x64xbf16>
    %103 = vector.shape_cast %102 : vector<1x32x64xbf16> to vector<32x64xbf16>
    %cst_44 = arith.constant dense<0.000000e+00> : vector<16x64xf32>
    %104 = tpu.matmul %101, %103, %cst_44 {dimension_numbers = #tpu.dot_dimension_numbers<[1], [0], [0], [1], [0, 0, 1, 1], [], []>} : vector<16x32xbf16>, vector<32x64xbf16>, vector<16x64xf32> -> vector<16x64xf32>
    %c0_45 = arith.constant 0 : index
    %c0_46 = arith.constant 0 : index
    %c0_47 = arith.constant 0 : index
    %105 = vector.load %arg10[%c0_45, %c0_46, %c0_47] : memref<1x1x64xf32, #tpu.memory_space<vmem>>, vector<1x1x64xf32>
    %106 = vector.shape_cast %105 : vector<1x1x64xf32> to vector<1x64xf32>
    %107 = vector.broadcast %106 : vector<1x64xf32> to vector<16x64xf32>
    %108 = arith.addf %104, %107 : vector<16x64xf32>
    %cst_48 = arith.constant 0.000000e+00 : f32
    %109 = vector.broadcast %cst_48 : f32 to vector<16x64xf32>
    %110 = arith.maximumf %108, %109 : vector<16x64xf32>
    %111 = arith.truncf %110 : vector<16x64xf32> to vector<16x64xbf16>
    %c0_49 = arith.constant 0 : index
    %c0_50 = arith.constant 0 : index
    %c0_51 = arith.constant 0 : index
    %112 = vector.load %arg11[%c0_49, %c0_50, %c0_51] : memref<1x64x32xbf16, #tpu.memory_space<vmem>>, vector<1x64x32xbf16>
    %113 = vector.shape_cast %112 : vector<1x64x32xbf16> to vector<64x32xbf16>
    %cst_52 = arith.constant dense<0.000000e+00> : vector<16x32xf32>
    %114 = tpu.matmul %111, %113, %cst_52 {dimension_numbers = #tpu.dot_dimension_numbers<[1], [0], [0], [1], [0, 0, 1, 1], [], []>} : vector<16x64xbf16>, vector<64x32xbf16>, vector<16x32xf32> -> vector<16x32xf32>
    %c0_53 = arith.constant 0 : index
    %c0_54 = arith.constant 0 : index
    %c0_55 = arith.constant 0 : index
    %115 = vector.load %arg12[%c0_53, %c0_54, %c0_55] : memref<1x1x32xf32, #tpu.memory_space<vmem>>, vector<1x1x32xf32>
    %116 = vector.shape_cast %115 : vector<1x1x32xf32> to vector<1x32xf32>
    %117 = vector.broadcast %116 : vector<1x32xf32> to vector<16x32xf32>
    %118 = arith.addf %114, %117 : vector<16x32xf32>
    %119 = arith.addf %100, %118 : vector<16x32xf32>
    %c0_56 = arith.constant 0 : index
    %c0_57 = arith.constant 0 : index
    %c0_58 = arith.constant 0 : index
    %120 = vector.load %arg13[%c0_56, %c0_57, %c0_58] : memref<1x1x32xf32, #tpu.memory_space<vmem>>, vector<1x1x32xf32>
    %121 = vector.shape_cast %120 : vector<1x1x32xf32> to vector<1x32xf32>
    %c0_59 = arith.constant 0 : index
    %c0_60 = arith.constant 0 : index
    %c0_61 = arith.constant 0 : index
    %122 = vector.load %arg14[%c0_59, %c0_60, %c0_61] : memref<1x1x32xf32, #tpu.memory_space<vmem>>, vector<1x1x32xf32>
    %123 = vector.shape_cast %122 : vector<1x1x32xf32> to vector<1x32xf32>
    %cst_62 = arith.constant dense<0.000000e+00> : vector<16xf32>
    %124 = vector.multi_reduction <add>, %119, %cst_62 [1] : vector<16x32xf32> to vector<16xf32>
    %125 = vector.shape_cast %124 : vector<16xf32> to vector<16x1xf32>
    %cst_63 = arith.constant 3.200000e+01 : f32
    %126 = vector.broadcast %cst_63 : f32 to vector<16x1xf32>
    %127 = arith.divf %125, %126 : vector<16x1xf32>
    %128 = vector.broadcast %127 : vector<16x1xf32> to vector<16x32xf32>
    %129 = arith.subf %119, %128 : vector<16x32xf32>
    %130 = arith.mulf %129, %129 : vector<16x32xf32>
    %cst_64 = arith.constant dense<0.000000e+00> : vector<16xf32>
    %131 = vector.multi_reduction <add>, %130, %cst_64 [1] : vector<16x32xf32> to vector<16xf32>
    %132 = vector.shape_cast %131 : vector<16xf32> to vector<16x1xf32>
    %cst_65 = arith.constant 3.200000e+01 : f32
    %133 = vector.broadcast %cst_65 : f32 to vector<16x1xf32>
    %134 = arith.divf %132, %133 : vector<16x1xf32>
    %135 = vector.broadcast %127 : vector<16x1xf32> to vector<16x32xf32>
    %136 = arith.subf %119, %135 : vector<16x32xf32>
    %cst_66 = arith.constant 9.99999974E-6 : f32
    %137 = vector.broadcast %cst_66 : f32 to vector<16x1xf32>
    %138 = arith.addf %134, %137 : vector<16x1xf32>
    %139 = math.rsqrt %138 : vector<16x1xf32>
    %140 = vector.broadcast %139 : vector<16x1xf32> to vector<16x32xf32>
    %141 = arith.mulf %136, %140 : vector<16x32xf32>
    %142 = vector.broadcast %121 : vector<1x32xf32> to vector<16x32xf32>
    %143 = arith.mulf %141, %142 : vector<16x32xf32>
    %144 = vector.broadcast %123 : vector<1x32xf32> to vector<16x32xf32>
    %145 = arith.addf %143, %144 : vector<16x32xf32>
    %c0_67 = arith.constant 0 : index
    %c0_68 = arith.constant 0 : index
    %146 = vector.load %arg16[%c0_67, %c0_68] : memref<16x32xf32, #tpu.memory_space<vmem>>, vector<16x32xf32>
    tpu.vector_store %arg16[%c0_67, %c0_68], %145 {strides = array<i32>} : memref<16x32xf32, #tpu.memory_space<vmem>>, vector<16x32xf32>,
    %c1_i32 = arith.constant 1 : i32
    %147 = arith.cmpi eq, %arg0, %c1_i32 : i32
    %148 = arith.extui %147 : i1 to i32
    %c0_i32_69 = arith.constant 0 : i32
    %149 = arith.cmpi ne, %148, %c0_i32_69 : i32
    scf.if %149 {
      %c0_70 = arith.constant 0 : index
      %c0_71 = arith.constant 0 : index
      %150 = vector.load %arg15[%c0_70, %c0_71] : memref<16x32xf32, #tpu.memory_space<vmem>>, vector<16x32xf32>
      tpu.vector_store %arg15[%c0_70, %c0_71], %145 {strides = array<i32>} : memref<16x32xf32, #tpu.memory_space<vmem>>, vector<16x32xf32>,
    } else {
    }
    return
  }
  func.func @transform_0(%arg0: i32) -> (i32, i32) {
    %c0_i32 = arith.constant 0 : i32
    %c0_i32_0 = arith.constant 0 : i32
    %c0_i32_1 = arith.constant 0 : i32
    return %c0_i32, %c0_i32_0 : i32, i32
  }
  func.func @transform_1(%arg0: i32) -> (i32, i32, i32) {
    %c0_i32 = arith.constant 0 : i32
    %c0_i32_0 = arith.constant 0 : i32
    %c0_i32_1 = arith.constant 0 : i32
    %c0_i32_2 = arith.constant 0 : i32
    return %c0_i32, %c0_i32_0, %c0_i32_1 : i32, i32, i32
  }
  func.func @transform_2(%arg0: i32) -> (i32, i32, i32, i32) {
    %c0_i32 = arith.constant 0 : i32
    %c0_i32_0 = arith.constant 0 : i32
    %c0_i32_1 = arith.constant 0 : i32
    %c0_i32_2 = arith.constant 0 : i32
    return %arg0, %c0_i32, %c0_i32_0, %c0_i32_1 : i32, i32, i32, i32
  }
  func.func @transform_3(%arg0: i32) -> (i32, i32, i32, i32) {
    %c0_i32 = arith.constant 0 : i32
    %c0_i32_0 = arith.constant 0 : i32
    %c0_i32_1 = arith.constant 0 : i32
    %c0_i32_2 = arith.constant 0 : i32
    return %arg0, %c0_i32, %c0_i32_0, %c0_i32_1 : i32, i32, i32, i32
  }
  func.func @transform_4(%arg0: i32) -> (i32, i32, i32, i32) {
    %c0_i32 = arith.constant 0 : i32
    %c0_i32_0 = arith.constant 0 : i32
    %c0_i32_1 = arith.constant 0 : i32
    %c0_i32_2 = arith.constant 0 : i32
    return %arg0, %c0_i32, %c0_i32_0, %c0_i32_1 : i32, i32, i32, i32
  }
  func.func @transform_5(%arg0: i32) -> (i32, i32, i32) {
    %c0_i32 = arith.constant 0 : i32
    %c0_i32_0 = arith.constant 0 : i32
    %c0_i32_1 = arith.constant 0 : i32
    return %arg0, %c0_i32, %c0_i32_0 : i32, i32, i32
  }
  func.func @transform_6(%arg0: i32) -> (i32, i32, i32) {
    %c0_i32 = arith.constant 0 : i32
    %c0_i32_0 = arith.constant 0 : i32
    %c0_i32_1 = arith.constant 0 : i32
    return %arg0, %c0_i32, %c0_i32_0 : i32, i32, i32
  }
  func.func @transform_7(%arg0: i32) -> (i32, i32, i32) {
    %c0_i32 = arith.constant 0 : i32
    %c0_i32_0 = arith.constant 0 : i32
    %c0_i32_1 = arith.constant 0 : i32
    return %arg0, %c0_i32, %c0_i32_0 : i32, i32, i32
  }
  func.func @transform_8(%arg0: i32) -> (i32, i32, i32) {
    %c0_i32 = arith.constant 0 : i32
    %c0_i32_0 = arith.constant 0 : i32
    %c0_i32_1 = arith.constant 0 : i32
    return %arg0, %c0_i32, %c0_i32_0 : i32, i32, i32
  }
  func.func @transform_9(%arg0: i32) -> (i32, i32, i32) {
    %c0_i32 = arith.constant 0 : i32
    %c0_i32_0 = arith.constant 0 : i32
    %c0_i32_1 = arith.constant 0 : i32
    return %arg0, %c0_i32, %c0_i32_0 : i32, i32, i32
  }
  func.func @transform_10(%arg0: i32) -> (i32, i32, i32) {
    %c0_i32 = arith.constant 0 : i32
    %c0_i32_0 = arith.constant 0 : i32
    %c0_i32_1 = arith.constant 0 : i32
    return %arg0, %c0_i32, %c0_i32_0 : i32, i32, i32
  }
  func.func @transform_11(%arg0: i32) -> (i32, i32, i32) {
    %c0_i32 = arith.constant 0 : i32
    %c0_i32_0 = arith.constant 0 : i32
    %c0_i32_1 = arith.constant 0 : i32
    return %arg0, %c0_i32, %c0_i32_0 : i32, i32, i32
  }
  func.func @transform_12(%arg0: i32) -> (i32, i32, i32) {
    %c0_i32 = arith.constant 0 : i32
    %c0_i32_0 = arith.constant 0 : i32
    %c0_i32_1 = arith.constant 0 : i32
    return %arg0, %c0_i32, %c0_i32_0 : i32, i32, i32
  }
  func.func @transform_13(%arg0: i32) -> (i32, i32, i32) {
    %c0_i32 = arith.constant 0 : i32
    %c0_i32_0 = arith.constant 0 : i32
    %c0_i32_1 = arith.constant 0 : i32
    return %arg0, %c0_i32, %c0_i32_0 : i32, i32, i32
  }
  func.func @transform_14(%arg0: i32) -> (i32, i32) {
    %c0_i32 = arith.constant 0 : i32
    %c0_i32_0 = arith.constant 0 : i32
    %c0_i32_1 = arith.constant 0 : i32
    return %c0_i32, %c0_i32_0 : i32, i32
  }
}

</mosaic_0001>

<bundles_post_ra>
// kernel: bert_encoder_forward.1
= control target key start
LH: loop header
LB: loop body
LE: loop exit
PB: predicated region body
PF: predicated region fallthrough
CT: control target
= control target key end

     0   :  { %s3250_s0 = inlined_call_operand.vmem [shape: f32[16,32], index: 0, kind: input, shape index: {}]   ;;  %s3251_s1 = inlined_call_operand.vmem [shape: f32[4,1,8], index: 1, kind: input, shape index: {}]   ;;  %s3252_s2 = inlined_call_operand.vmem [shape: bf16[2,6,32,16], index: 2, kind: input, shape index: {}]   ;;  %s3253_s3 = inlined_call_operand.vmem [shape: f32[2,6,1,16], index: 3, kind: input, shape index: {}]   ;;  %s3254_s4 = inlined_call_operand.vmem [shape: bf16[2,2,16,32], index: 4, kind: input, shape index: {}]   ;;  %s3255_s5 = inlined_call_operand.vmem [shape: f32[2,1,32], index: 5, kind: input, shape index: {}]   ;;  %s3256_s6 = inlined_call_operand.vmem [shape: f32[2,1,32], index: 6, kind: input, shape index: {}]   ;;  %s3257_s7 = inlined_call_operand.vmem [shape: f32[2,1,32], index: 7, kind: input, shape index: {}]   ;;  %s3258_s8 = inlined_call_operand.vmem [shape: bf16[2,32,64], index: 8, kind: input, shape index: {}]   ;;  %s3259_s9 = inlined_call_operand.vmem [shape: f32[2,1,64], index: 9, kind: input, shape index: {}]   ;;  %s3260_s10 = inlined_call_operand.vmem [shape: bf16[2,64,32], index: 10, kind: input, shape index: {}]   ;;  %s3261_s11 = inlined_call_operand.vmem [shape: f32[2,1,32], index: 11, kind: input, shape index: {}]   ;;  %s3262_s12 = inlined_call_operand.vmem [shape: f32[2,1,32], index: 12, kind: input, shape index: {}]   ;;  %s3263_s13 = inlined_call_operand.vmem [shape: f32[2,1,32], index: 13, kind: input, shape index: {}]   ;;  %s3264_s14 = inlined_call_operand.hbm [shape: f32[16,32], index: 14, kind: output, shape index: {}]  }
   0x1   :  { %3270 = sst [smem:[#allocation8_spill]] %s3250_s0 }
   0x2   :  { %3271 = sst [smem:[#allocation9_spill]] %s3251_s1 }
   0x3   :  { %3272 = sst [smem:[#allocation10_spill]] %s3252_s2 }
   0x4   :  { %3273 = sst [smem:[#allocation11_spill]] %s3254_s4 }
   0x5   :  { %3274 = sst [smem:[#allocation12_spill]] %s3264_s14 }
   0x6   :  { %19 = vsyncpa [#allocation4], 0  ;;  %s2889_s29 = smov 0  }
   0x7 LB: > { %3275 = sst [smem:[#allocation6_spill]] %s2806_s29  ;;  %s2895_s30 = sadd.s32 4294967295, %s2806_s29   ;;  %s2806_s29 = sphi %s2889_s29, %s25_s29  }
   0x8   : > { %p2368_p0 = scmp.ge.s32.totalorder %s2806_s29, 1  ;;  %p503_p1 = scmp.lt.s32.totalorder %s2806_s29, 3 }
   0xa   : > { %p504_p2 = pnand %p2368_p0, %p503_p1 }
   0xc   : > { %507 = sbr.rel (%p504_p2) target bundleno = 2362 (0x93a), region = 76 }
  0x13   : > { %p584_p3 = scmp.lt.s32.totalorder %s2895_s30, 1  ;;  %s3276_s4 = sld [smem:[#allocation11_spill]] }
  0x14   : > { %s3278_s2 = sld [smem:[#allocation10_spill]]  ;;  %p2376_p4 = scmp.ne.s32.totalorder %s2895_s30, 0 }
  0x15   : > { %s2901_s15 = scalar_select %p584_p3, %s2895_s30, 1 }
  0x16   : > { %vm636_vm0 = vcmask (!%p2376_p4), 261120  }
  0x17   : > { %s2704_s16 = smul.u32 96, %s2901_s15  ;;  %s2443_s17 = sshll.u32 %s2901_s15, 4 }
  0x18   : > { %s2705_s18 = smul.u32 6, %s2901_s15  ;;  %s2936_s23 = scalar_lea.vmem %s3258_s8, %s2443_s17 }
  0x19   : > { %s2909_s21 = scalar_lea.vmem %s3276_s4, %s2443_s17  ;;  %s614_s27 = scalar_lea.vmem %s3259_s9, %s2901_s15 }
  0x1a   : > { %3277 = sst [smem:[#allocation7_spill]] %s2909_s21  ;;  %s2914_s24 = scalar_lea.vmem %s3278_s2, %s2704_s16 }
  0x1b   : > { %s2923_s14 = scalar_lea.vmem %s3253_s3, %s2705_s18  ;;  %s2445_s29 = sshll.u32 %s2901_s15, 5 }
  0x1c   : > { %s2946_s2 = scalar_lea.vmem %s3260_s10, %s2445_s29  ;;  %s622_s4 = scalar_lea.vmem %s3261_s11, %s2901_s15 }
  0x1d   : > { %s625_s22 = scalar_lea.vmem %s3262_s12, %s2901_s15  ;;  %s628_s19 = scalar_lea.vmem %s3263_s13, %s2901_s15 }
  0x1e   : > { %633 = sbr.rel (%p2376_p4) target bundleno = 38 (0x26), region = 80  ;;  %s3279_s18 = sld [smem:[#allocation8_spill]] (!%p2376_p4) }
  0x24   : > { %v634_v0 = vld [vmem:[%s3279_s18] sm:$0xff] (!%p2376_p4)  ;;  %v635_v1 = vld [vmem:[%s3279_s18 + $0x8] sm:$0xff] (!%p2376_p4) }
  0x25   : > { %637 = vst.msk [vmem:[#allocation2] sm:$0xff] %vm636_vm0, %v634_v0  ;;  %638 = vst.msk [vmem:[#allocation2 + $0x8] sm:$0xff] %vm636_vm0, %v635_v1 }
  0x26 PF: > { %v2726_v2 = vld [vmem:[%s2914_s24] sm:$0xff]   ;;  %v2808_v3 = vmov 0.0   ;;  %v2727_v4 = vld [vmem:[%s2914_s24 + $0x8] sm:$0xff]   ;;  %vm2809_vm1 = vmmov 0   ;;  %vm725_vm2 = vcmask 261120   ;;  %v2728_v9 = vld [vmem:[%s2914_s24 + $0x10] sm:$0xff]   ;;  %s3283_s0 = scalar_lea.vmem %s3256_s6, %s2901_s15  ;;  %s3284_s17 = scalar_lea.vmem %s3257_s7, %s2901_s15 }
  0x27   : > { %2516 = vmatprep.subr.bf16.mxu0 %v2808_v3  ;;  %2524 = vmatprep.subr.bf16.mxu1 %v2808_v3  ;;  %v2729_v10 = vld [vmem:[%s2914_s24 + $0x18] sm:$0xff]   ;;  %v2730_v11 = vld [vmem:[%s2914_s24 + $0x20] sm:$0xff]   ;;  %v2731_v12 = vld [vmem:[%s2914_s24 + $0x28] sm:$0xff]   ;;  %vm1280_vm3 = vcmask 130048   ;;  %vm1561_vm4 = vcmask 1043456   ;;  %vm1505_vm10 = vcmask 64512  }
  0x28   : > { %2517 = vmatpush3.bf16.msra.mxu0 %v2726_v2  ;;  %2525 = vmatpush3.bf16.msra.mxu1 %v2726_v2  ;;  %v2732_v13 = vld [vmem:[%s2914_s24 + $0x30] sm:$0xff]   ;;  %v2733_v14 = vld [vmem:[%s2914_s24 + $0x38] sm:$0xff]   ;;  %v2734_v15 = vld [vmem:[%s2914_s24 + $0x40] sm:$0xff]   ;;  %s3281_s26 = sld [smem:[#allocation7_spill]]  ;;  %vm2107_vm14 = vcmask 523264   ;;  %p2438_p5 = scmp.ne.s32.totalorder %s2895_s30, 1 }
  0x29   : > { %2518 = vmatprep.subr.bf16.mxu0 %v2808_v3  ;;  %2526 = vmatprep.subr.bf16.mxu1 %v2808_v3  ;;  %v2735_v16 = vld [vmem:[%s2914_s24 + $0x48] sm:$0xff]   ;;  %v2736_v17 = vld [vmem:[%s2914_s24 + $0x50] sm:$0xff]   ;;  %v2737_v18 = vld [vmem:[%s2914_s24 + $0x58] sm:$0xff]   ;;  %s3280_s24 = sld [smem:[#allocation9_spill]] }
  0x2a   : > { %2520 = vmatprep.mubr.msk.bf16.mxu0 %vm2809_vm1, %v2808_v3  ;;  %2528 = vmatprep.mubr.msk.bf16.mxu1 %vm2809_vm1, %v2808_v3  ;;  %v2381_v35 = vld [vmem:[%s2923_s14 + $0x2] ss:$0 sm:$0xff]  ;;  %v2379_v48 = vld [vmem:[%s2923_s14] ss:$0 sm:$0xff]  ;;  %v2382_v51 = vld [vmem:[%s2923_s14 + $0x3] ss:$0 sm:$0xff] }
  0x2c   : > { %v2971_v5 = vld [vmem:[#allocation2] sm:$0xff]  ;;  %v2973_v6 = vld [vmem:[#allocation2 + $0x8] sm:$0xff]  ;;  %2519 = vmatpush3.bf16.msra.mxu0 %v2727_v4  ;;  %2527 = vmatpush3.bf16.msra.mxu1 %v2727_v4 }
  0x2d   : > { %v2983_v7 = vpack.c.bf16 %v2971_v5, %v2971_v5  ;;  %v2987_v8 = vpack.c.bf16 %v2973_v6, %v2973_v6  ;;  %2532 = vmatprep.subr.bf16.mxu0 %v2808_v3  ;;  %2540 = vmatprep.subr.bf16.mxu1 %v2808_v3 }
  0x2f   : > { %2521 = vmatmul.mubr.msk.bf16.vlgmr.msra.gmra.mrb[0].mxu0 %vm725_vm2, %v2983_v7  ;;  %2529 = vmatmul.mubr.msk.bf16.vlgmr.msra.gmra.mrb[0].mxu1 %vm725_vm2, %v2987_v8 }
  0x30   : > { %2533 = vmatpush3.bf16.msra.mxu0 %v2728_v9  ;;  %2541 = vmatpush3.bf16.msra.mxu1 %v2728_v9 }
  0x31   : > { %2534 = vmatprep.subr.bf16.mxu0 %v2808_v3  ;;  %2542 = vmatprep.subr.bf16.mxu1 %v2808_v3 }
  0x32   : > { %2536 = vmatprep.mubr.msk.bf16.mxu0 %vm2809_vm1, %v2808_v3  ;;  %2544 = vmatprep.mubr.msk.bf16.mxu1 %vm2809_vm1, %v2808_v3 }
  0x34   : > { %2535 = vmatpush3.bf16.msra.mxu0 %v2729_v10  ;;  %2543 = vmatpush3.bf16.msra.mxu1 %v2729_v10 }
  0x35   : > { %2548 = vmatprep.subr.bf16.mxu0 %v2808_v3  ;;  %2556 = vmatprep.subr.bf16.mxu1 %v2808_v3 }
  0x37   : > { %2537 = vmatmul.mubr.msk.bf16.vlgmr.msra.gmra.mrb[4].mxu0 %vm725_vm2, %v2983_v7  ;;  %2545 = vmatmul.mubr.msk.bf16.vlgmr.msra.gmra.mrb[4].mxu1 %vm725_vm2, %v2987_v8 }
  0x38   : > { %2549 = vmatpush3.bf16.msra.mxu0 %v2730_v11  ;;  %2557 = vmatpush3.bf16.msra.mxu1 %v2730_v11 }
  0x39   : > { %2550 = vmatprep.subr.bf16.mxu0 %v2808_v3  ;;  %2558 = vmatprep.subr.bf16.mxu1 %v2808_v3 }
  0x3a   : > { %2552 = vmatprep.mubr.msk.bf16.mxu0 %vm2809_vm1, %v2808_v3  ;;  %2560 = vmatprep.mubr.msk.bf16.mxu1 %vm2809_vm1, %v2808_v3 }
  0x3c   : > { %2551 = vmatpush3.bf16.msra.mxu0 %v2731_v12  ;;  %2559 = vmatpush3.bf16.msra.mxu1 %v2731_v12 }
  0x3d   : > { %2564 = vmatprep.subr.bf16.mxu0 %v2808_v3  ;;  %2572 = vmatprep.subr.bf16.mxu1 %v2808_v3 }
  0x3f   : > { %2553 = vmatmul.mubr.msk.bf16.vlgmr.msra.gmra.mrb[8].mxu0 %vm725_vm2, %v2983_v7  ;;  %2561 = vmatmul.mubr.msk.bf16.vlgmr.msra.gmra.mrb[8].mxu1 %vm725_vm2, %v2987_v8 }
  0x40   : > { %2565 = vmatpush3.bf16.msra.mxu0 %v2732_v13  ;;  %2573 = vmatpush3.bf16.msra.mxu1 %v2732_v13 }
  0x41   : > { %2566 = vmatprep.subr.bf16.mxu0 %v2808_v3  ;;  %2574 = vmatprep.subr.bf16.mxu1 %v2808_v3 }
  0x42   : > { %2568 = vmatprep.mubr.msk.bf16.mxu0 %vm2809_vm1, %v2808_v3  ;;  %2576 = vmatprep.mubr.msk.bf16.mxu1 %vm2809_vm1, %v2808_v3 }
  0x44   : > { %2567 = vmatpush3.bf16.msra.mxu0 %v2733_v14  ;;  %2575 = vmatpush3.bf16.msra.mxu1 %v2733_v14  ;;  %v2383_v14 = vld [vmem:[%s2923_s14 + $0x4] ss:$0 sm:$0xff] }
  0x45   : > { %2580 = vmatprep.subr.bf16.mxu0 %v2808_v3  ;;  %2588 = vmatprep.subr.bf16.mxu1 %v2808_v3 }
  0x47   : > { %2569 = vmatmul.mubr.msk.bf16.vlgmr.msra.gmra.mrb[12].mxu0 %vm725_vm2, %v2983_v7  ;;  %2577 = vmatmul.mubr.msk.bf16.vlgmr.msra.gmra.mrb[12].mxu1 %vm725_vm2, %v2987_v8 }
  0x48   : > { %2581 = vmatpush3.bf16.msra.mxu0 %v2734_v15  ;;  %2589 = vmatpush3.bf16.msra.mxu1 %v2734_v15 }
  0x49   : > { %2582 = vmatprep.subr.bf16.mxu0 %v2808_v3  ;;  %2590 = vmatprep.subr.bf16.mxu1 %v2808_v3 }
  0x4a   : > { %2584 = vmatprep.mubr.msk.bf16.mxu0 %vm2809_vm1, %v2808_v3  ;;  %2592 = vmatprep.mubr.msk.bf16.mxu1 %vm2809_vm1, %v2808_v3 }
  0x4c   : > { %2583 = vmatpush3.bf16.msra.mxu0 %v2735_v16  ;;  %2591 = vmatpush3.bf16.msra.mxu1 %v2735_v16 }
  0x4d   : > { %2596 = vmatprep.subr.bf16.mxu0 %v2808_v3  ;;  %2604 = vmatprep.subr.bf16.mxu1 %v2808_v3 }
  0x4f   : > { %2585 = vmatmul.mubr.msk.bf16.vlgmr.msra.gmra.mrb[16].mxu0 %vm725_vm2, %v2983_v7  ;;  %2593 = vmatmul.mubr.msk.bf16.vlgmr.msra.gmra.mrb[16].mxu1 %vm725_vm2, %v2987_v8 }
  0x50   : > { %2600 = vmatprep.mubr.msk.bf16.mxu0 %vm2809_vm1, %v2808_v3  ;;  %2608 = vmatprep.mubr.msk.bf16.mxu1 %vm2809_vm1, %v2808_v3 }
  0x51   : > { %2597 = vmatpush3.bf16.msra.mxu0 %v2736_v17  ;;  %2605 = vmatpush3.bf16.msra.mxu1 %v2736_v17 }
  0x52   : > { %2598 = vmatprep.subr.bf16.mxu0 %v2808_v3  ;;  %2606 = vmatprep.subr.bf16.mxu1 %v2808_v3 }
  0x55   : > { %2599 = vmatpush3.bf16.msra.mxu0 %v2737_v18  ;;  %2607 = vmatpush3.bf16.msra.mxu1 %v2737_v18 }
  0x56   : > { %2612 = vmatprep.subr.bf16.mxu0 %v2808_v3  ;;  %2618 = vmatprep.subr.bf16.mxu1 %v2808_v3 }
  0x58   : > { %2601 = vmatmul.mubr.msk.bf16.vlgmr.msra.gmra.mrb[20].mxu0 %vm725_vm2, %v2983_v7  ;;  %2609 = vmatmul.mubr.msk.bf16.vlgmr.msra.gmra.mrb[20].mxu1 %vm725_vm2, %v2987_v8  ;;  %v2380_v7 = vld [vmem:[%s2923_s14 + $0x1] ss:$0 sm:$0xff] }
  0x59   : > { %2614 = vmatprep.mubr.msk.bf16.mxu0 %vm2809_vm1, %v2808_v3  ;;  %2620 = vmatprep.mubr.msk.bf16.mxu1 %vm2809_vm1, %v2808_v3 }
 0x102   : > { %v763_v19 = vpop.f32.mrb[0].mxu0  ;;  %v806_v20 = vpop.f32.mrb[0].mxu1 }
 0x103   : > { %v2522_v21 = vpop.f32.mrb[1].mxu0  ;;  %v2530_v22 = vpop.f32.mrb[1].mxu1  ;;  %v764_v52 = vadd.f32 %v2379_v48, %v763_v19  ;;  %v807_v53 = vadd.f32 %v2379_v48, %v806_v20 }
 0x104   : > { %v766_v23 = vpop.f32.mrb[2].mxu0  ;;  %v809_v24 = vpop.f32.mrb[2].mxu1 }
 0x105   : > { %v2523_v25 = vpop.f32.mrb[3].mxu0  ;;  %v2531_v26 = vpop.f32.mrb[3].mxu1  ;;  %v1272_v62 = vpack.c.bf16 %v764_v52, %v764_v52  ;;  %v1273_v63 = vpack.c.bf16 %v807_v53, %v807_v53  ;;  %v1471_v52 = vld [vmem:[%s3280_s24 + $0x2] sm:$0x1] }
 0x106   : > { %vm1475_vm7 = vcmp.gt.f32.partialorder %v1471_v52, 0.5 }
 0x10a   : > { %v858_v27 = vpop.f32.mrb[4].mxu0  ;;  %v898_v28 = vpop.f32.mrb[4].mxu1 }
 0x10b   : > { %v2538_v29 = vpop.f32.mrb[5].mxu0  ;;  %v2546_v30 = vpop.f32.mrb[5].mxu1  ;;  %v859_v10 = vadd.f32 %v2380_v7, %v858_v27  ;;  %v899_v11 = vadd.f32 %v2380_v7, %v898_v28 }
 0x10c   : > { %v861_v31 = vpop.f32.mrb[6].mxu0  ;;  %v901_v32 = vpop.f32.mrb[6].mxu1  ;;  %v2384_v29 = vld [vmem:[%s2923_s14 + $0x5] ss:$0 sm:$0xff]  ;;  %s3282_s14 = scalar_lea.vmem %s3255_s5, %s2901_s15 }
 0x10d   : > { %v2539_v33 = vpop.f32.mrb[7].mxu0  ;;  %v2547_v34 = vpop.f32.mrb[7].mxu1  ;;  %v1274_v12 = vpack.c.bf16 %v859_v10, %v859_v10  ;;  %v1275_v13 = vpack.c.bf16 %v899_v11, %v899_v11 }
 0x112   : > { %v950_v36 = vpop.f32.mrb[8].mxu0  ;;  %v990_v37 = vpop.f32.mrb[8].mxu1 }
 0x113   : > { %v951_v38 = vadd.f32 %v2381_v35, %v950_v36  ;;  %v991_v39 = vadd.f32 %v2381_v35, %v990_v37  ;;  %v2554_v40 = vpop.f32.mrb[9].mxu0  ;;  %v2562_v41 = vpop.f32.mrb[9].mxu1 }
 0x114   : > { %v953_v42 = vpop.f32.mrb[10].mxu0  ;;  %v993_v43 = vpop.f32.mrb[10].mxu1 }
 0x115   : > { %v1276_v44 = vpack.c.bf16 %v951_v38, %v951_v38  ;;  %v1277_v45 = vpack.c.bf16 %v991_v39, %v991_v39  ;;  %v2555_v46 = vpop.f32.mrb[11].mxu0  ;;  %v2563_v47 = vpop.f32.mrb[11].mxu1 }
 0x116   : > { %v1470_v47 = vld [vmem:[%s3280_s24 + $0x1] sm:$0x1] }
 0x117   : > { %v1285_v49 = vsel %vm1280_vm3, %v1276_v44, 0  ;;  %v1331_v50 = vsel %vm1280_vm3, %v1277_v45, 0  ;;  %v1481_v44 = vlaneseq  ;;  %v1469_v45 = vld [vmem:[%s3280_s24] sm:$0x1]  ;;  %vm1474_vm6 = vcmp.gt.f32.partialorder %v1470_v47, 0.5 }
 0x118   : > { %2613 = vmatpush3.bf16.xpose.msra.mxu0 %v1285_v49  ;;  %2619 = vmatpush3.bf16.xpose.msra.mxu1 %v1331_v50  ;;  %vm1473_vm5 = vcmp.gt.f32.partialorder %v1469_v45, 0.5  ;;  %v2810_v49 = vmov 0  }
 0x119   : > { %2624 = vmatprep.subr.bf16.mxu0 %v2808_v3  ;;  %2630 = vmatprep.subr.bf16.mxu1 %v2808_v3  ;;  %v1482_v46 = vshrl.u32 %v1481_v44, 7  ;;  %v1477_v50 = vsel %vm1473_vm5, 1, %v2810_v49 }
 0x11a   : > { %v1042_v54 = vpop.f32.mrb[12].mxu0  ;;  %v1082_v55 = vpop.f32.mrb[12].mxu1 }
 0x11b   : > { %v1043_v56 = vadd.f32 %v2382_v51, %v1042_v54  ;;  %v1083_v57 = vadd.f32 %v2382_v51, %v1082_v55  ;;  %v2570_v58 = vpop.f32.mrb[13].mxu0  ;;  %v2578_v59 = vpop.f32.mrb[13].mxu1  ;;  %v1483_v48 = vsub.s32 0, %v1482_v46  ;;  %v1478_v51 = vsel %vm1474_vm6, 1, %v2810_v49  ;;  %v1472_v54 = vld [vmem:[%s3280_s24 + $0x3] sm:$0x1] }
 0x11c   : > { %v1045_v60 = vpop.f32.mrb[14].mxu0  ;;  %v1085_v61 = vpop.f32.mrb[14].mxu1  ;;  %vm1476_vm9 = vcmp.gt.f32.partialorder %v1472_v54, 0.5 }
 0x11d   : > { %v1278_v0 = vpack.c.bf16 %v1043_v56, %v1043_v56  ;;  %v1279_v1 = vpack.c.bf16 %v1083_v57, %v1083_v57  ;;  %v2571_v2 = vpop.f32.mrb[15].mxu0  ;;  %v2579_v4 = vpop.f32.mrb[15].mxu1  ;;  %v1484_v53 = vrot.slane %v1477_v50, %v1483_v48  ;;  %v1488_v55 = vrot.slane %v1478_v51, %v1483_v48 }
 0x11e   : > { %v1480_v7 = vsel %vm1476_vm9, 1, %v2810_v49 }
 0x11f   : > { %v1377_v8 = vsel %vm1280_vm3, %v1278_v0, 0  ;;  %v1423_v9 = vsel %vm1280_vm3, %v1279_v1, 0  ;;  %2615 = vmatmul.mubr.msk.bf16.vlgmr.msra.gmra.mrb[24].mxu0 %vm1280_vm3, %v1272_v62  ;;  %2621 = vmatmul.mubr.msk.bf16.vlgmr.msra.gmra.mrb[24].mxu1 %vm1280_vm3, %v1273_v63  ;;  %vm1497_vm8 = vcmp.eq.s32.totalorder %v1484_v53, 1  ;;  %v1479_v62 = vsel %vm1475_vm7, 1, %v2810_v49 }
 0x120   : > { %2625 = vmatpush3.bf16.xpose.msra.mxu0 %v1377_v8  ;;  %2631 = vmatpush3.bf16.xpose.msra.mxu1 %v1423_v9  ;;  %vm1498_vm11 = vcmp.eq.s32.totalorder %v1488_v55, 1  ;;  %v1492_v9 = vrot.slane %v1479_v62, %v1483_v48  ;;  %v1496_v11 = vrot.slane %v1480_v7, %v1483_v48 }
 0x121   : > { %2626 = vmatprep.mubr.msk.bf16.mxu0 %vm2809_vm1, %v2808_v3  ;;  %2632 = vmatprep.mubr.msk.bf16.mxu1 %vm2809_vm1, %v2808_v3 }
 0x122   : > { %2636 = vmatprep.subr.bf16.mxu0 %v2808_v3  ;;  %2642 = vmatprep.subr.bf16.mxu1 %v2808_v3  ;;  %v1134_v15 = vpop.f32.mrb[16].mxu0  ;;  %v1174_v16 = vpop.f32.mrb[16].mxu1  ;;  %vm1499_vm12 = vcmp.eq.s32.totalorder %v1492_v9, 1  ;;  %vm1500_vm13 = vcmp.eq.s32.totalorder %v1496_v11, 1 }
 0x123   : > { %v1135_v17 = vadd.f32 %v2383_v14, %v1134_v15  ;;  %v2586_v18 = vpop.f32.mrb[17].mxu0  ;;  %v1175_v19 = vadd.f32 %v2383_v14, %v1174_v16  ;;  %v2594_v20 = vpop.f32.mrb[17].mxu1 }
 0x124   : > { %v1137_v21 = vpop.f32.mrb[18].mxu0  ;;  %v1177_v22 = vpop.f32.mrb[18].mxu1 }
 0x125   : > { %v1554_v23 = vpack.c.bf16 %v1135_v17, %v1135_v17  ;;  %v2587_v24 = vpop.f32.mrb[19].mxu0  ;;  %v1555_v25 = vpack.c.bf16 %v1175_v19, %v1175_v19  ;;  %v2595_v26 = vpop.f32.mrb[19].mxu1 }
 0x127   : > { %2627 = vmatmul.mubr.msk.bf16.vlgmr.msra.gmra.mrb[28].mxu0 %vm1280_vm3, %v1274_v12  ;;  %2633 = vmatmul.mubr.msk.bf16.vlgmr.msra.gmra.mrb[28].mxu1 %vm1280_vm3, %v1275_v13  ;;  %v1563_v27 = vsel %vm1561_vm4, %v1554_v23, 0  ;;  %v1609_v28 = vsel %vm1561_vm4, %v1555_v25, 0 }
 0x128   : > { %2638 = vmatprep.mubr.msk.bf16.mxu0 %vm2809_vm1, %v2808_v3  ;;  %2644 = vmatprep.mubr.msk.bf16.mxu1 %vm2809_vm1, %v2808_v3 }
 0x129   : > { %2637 = vmatpush3.bf16.msra.mxu0 %v1563_v27  ;;  %2643 = vmatpush3.bf16.msra.mxu1 %v1609_v28 }
 0x12a   : > { %2648 = vmatprep.subr.bf16.mxu0 %v2808_v3  ;;  %2654 = vmatprep.subr.bf16.mxu1 %v2808_v3 }
 0x12b   : > { %v1226_v30 = vpop.f32.mrb[20].mxu0  ;;  %v1266_v31 = vpop.f32.mrb[20].mxu1 }
 0x12c   : > { %v1227_v32 = vadd.f32 %v2384_v29, %v1226_v30  ;;  %v2602_v33 = vpop.f32.mrb[21].mxu0  ;;  %v1267_v34 = vadd.f32 %v2384_v29, %v1266_v31  ;;  %v2610_v35 = vpop.f32.mrb[21].mxu1 }
 0x12d   : > { %v1229_v36 = vpop.f32.mrb[22].mxu0  ;;  %v1269_v37 = vpop.f32.mrb[22].mxu1 }
 0x12e   : > { %v1556_v38 = vpack.c.bf16 %v1227_v32, %v1227_v32  ;;  %v2603_v39 = vpop.f32.mrb[23].mxu0  ;;  %v1557_v40 = vpack.c.bf16 %v1267_v34, %v1267_v34  ;;  %v2611_v41 = vpop.f32.mrb[23].mxu1 }
 0x130   : > { %v3100_v42 = vsel %vm1561_vm4, %v1556_v38, 0  ;;  %v3103_v43 = vsel %vm1561_vm4, %v1557_v40, 0 }
 0x1f2   : > { %v1321_v56 = vpop.f32.mrb[24].mxu0  ;;  %v1367_v57 = vpop.f32.mrb[24].mxu1 }
 0x1f3   : > { %v1465_v58 = vmul.f32 0.25, %v1321_v56  ;;  %v1466_v59 = vmul.f32 0.25, %v1367_v57  ;;  %v2616_v60 = vpop.f32.mrb[25].mxu0  ;;  %v2622_v61 = vpop.f32.mrb[25].mxu1 }
 0x1f4   : > { %v1324_v63 = vpop.f32.mrb[26].mxu0  ;;  %v1370_v0 = vpop.f32.mrb[26].mxu1 }
 0x1f5   : > { %v2617_v1 = vpop.f32.mrb[27].mxu0  ;;  %v2623_v2 = vpop.f32.mrb[27].mxu1  ;;  %v1501_v4 = vsel %vm1497_vm8, %v1465_v58, -1000000.0  ;;  %v1502_v10 = vsel %vm1498_vm11, %v1466_v59, -1000000.0 }
 0x1f6   : > { %v1506_v8 = vsel %vm1505_vm10, %v1501_v4, -inf  ;;  %v1509_v14 = vsel %vm1505_vm10, %v1502_v10, -inf  ;;  %v2739_v1 = vld [vmem:[%s3281_s26 + $0x8] sm:$0xff]  }
 0x1f7   : > { %1507 = vmax.xlane.f32.xlu0 %v1506_v8 }
 0x1fa   : > { %v1413_v12 = vpop.f32.mrb[28].mxu0  ;;  %v1459_v13 = vpop.f32.mrb[28].mxu1 }
 0x1fb   : > { %v1467_v15 = vmul.f32 0.25, %v1413_v12  ;;  %v1468_v16 = vmul.f32 0.25, %v1459_v13  ;;  %v2634_v17 = vpop.f32.mrb[29].mxu1  ;;  %1510 = vmax.xlane.f32.xlu0 %v1509_v14  ;;  %v2628_v18 = vpop.f32.mrb[29].mxu0 }
 0x1fc   : > { %v1416_v19 = vpop.f32.mrb[30].mxu0  ;;  %v1462_v20 = vpop.f32.mrb[30].mxu1 }
 0x1fd   : > { %v2629_v21 = vpop.f32.mrb[31].mxu0  ;;  %v2635_v22 = vpop.f32.mrb[31].mxu1  ;;  %v1503_v23 = vsel %vm1499_vm12, %v1467_v15, -1000000.0  ;;  %v1504_v25 = vsel %vm1500_vm13, %v1468_v16, -1000000.0 }
 0x1fe   : > { %v1512_v24 = vsel %vm1505_vm10, %v1503_v23, -inf  ;;  %v1515_v26 = vsel %vm1505_vm10, %v1504_v25, -inf }
 0x1ff   : > { %1513 = vmax.xlane.f32.xlu1 %v1512_v24 }
 0x203   : > { %1516 = vmax.xlane.f32.xlu1 %v1515_v26 }
 0x284   : > { %v1508_v27 = vpop.xlane.xlu0 %1507 }
 0x285   : > { %v1518_v28 = vsub.f32 %v1501_v4, %v1508_v27 }
 0x287   : > { %v1522_v29 = vmul.f32 1.442695, %v1518_v28 }
 0x288   : > { %v1511_v30 = vpop.xlane.xlu0 %1510 }
 0x289   : > { %2746 = vpow2.f32 %v1522_v29  ;;  %v1519_v31 = vsub.f32 %v1502_v10, %v1511_v30 }
 0x28b   : > { %v1524_v32 = vmul.f32 1.442695, %v1519_v31 }
 0x28c   : > { %v1514_v33 = vpop.xlane.xlu1 %1513 }
 0x28d   : > { %2748 = vpow2.f32 %v1524_v32  ;;  %v1520_v34 = vsub.f32 %v1503_v23, %v1514_v33 }
 0x28f   : > { %v1526_v35 = vmul.f32 1.442695, %v1520_v34 }
 0x290   : > { %v1517_v36 = vpop.xlane.xlu1 %1516 }
 0x291   : > { %2750 = vpow2.f32 %v1526_v35  ;;  %v1521_v37 = vsub.f32 %v1504_v25, %v1517_v36  ;;  %v2423_v35 = vld [vmem:[%s3282_s14] ss:$0 sm:$0xff] }
 0x293   : > { %v2747_v38 = vpop.eup %2746  ;;  %v1528_v39 = vmul.f32 1.442695, %v1521_v37 }
 0x294   : > { %v1530_v40 = vsel %vm1505_vm10, %v2747_v38, 0.0 }
 0x295   : > { %2752 = vpow2.f32 %v1528_v39  ;;  %1531 = vadd.xlane.f32.xlu0 %v1530_v40 }
 0x297   : > { %v2749_v41 = vpop.eup %2748 }
 0x298   : > { %v1533_v44 = vsel %vm1505_vm10, %v2749_v41, 0.0 }
 0x299   : > { %1534 = vadd.xlane.f32.xlu1 %v1533_v44 }
 0x29b   : > { %v2751_v45 = vpop.eup %2750 }
 0x29c   : > { %v1536_v46 = vsel %vm1505_vm10, %v2751_v45, 0.0 }
 0x29d   : > { %1537 = vadd.xlane.f32.xlu0 %v1536_v46 }
 0x29f   : > { %v2753_v47 = vpop.eup %2752 }
 0x2a0   : > { %v1539_v48 = vsel %vm1505_vm10, %v2753_v47, 0.0 }
 0x2a1   : > { %1540 = vadd.xlane.f32.xlu1 %v1539_v48 }
 0x322   : > { %v1532_v49 = vpop.xlane.xlu0 %1531 }
 0x323   : > { %2754 = vrcp.f32 %v1532_v49 }
 0x326   : > { %v1535_v50 = vpop.xlane.xlu1 %1534 }
 0x327   : > { %2756 = vrcp.f32 %v1535_v50 }
 0x32a   : > { %v1538_v51 = vpop.xlane.xlu0 %1537 }
 0x32b   : > { %2758 = vrcp.f32 %v1538_v51 }
 0x32d   : > { %v2755_v52 = vpop.eup %2754 }
 0x32e   : > { %v1546_v53 = vmul.f32 %v2755_v52, %v2747_v38  ;;  %v1541_v54 = vpop.xlane.xlu1 %1540 }
 0x32f   : > { %2760 = vrcp.f32 %v1541_v54 }
 0x330   : > { %v1550_v55 = vpack.c.bf16 %v1546_v53, %v1546_v53 }
 0x331   : > { %v2757_v56 = vpop.eup %2756 }
 0x332   : > { %v1547_v57 = vmul.f32 %v2757_v56, %v2749_v41  ;;  %2639 = vmatmul.mubr.msk.bf16.vlgmr.msra.gmra.mrb[32].mxu0 %vm1505_vm10, %v1550_v55 }
 0x333   : > { %2649 = vmatpush3.bf16.msra.mxu0 %v3100_v42  ;;  %2650 = vmatprep.mubr.msk.bf16.mxu0 %vm2809_vm1, %v2808_v3 }
 0x334   : > { %v1551_v58 = vpack.c.bf16 %v1547_v57, %v1547_v57  ;;  %2660 = vmatprep.subr.bf16.mxu0 %v2808_v3 }
 0x335   : > { %v2759_v59 = vpop.eup %2758 }
 0x336   : > { %v1548_v60 = vmul.f32 %v2759_v59, %v2751_v45  ;;  %2645 = vmatmul.mubr.msk.bf16.vlgmr.msra.gmra.mrb[32].mxu1 %vm1505_vm10, %v1551_v58 }
 0x337   : > { %2655 = vmatpush3.bf16.msra.mxu1 %v3103_v43  ;;  %2656 = vmatprep.mubr.msk.bf16.mxu1 %vm2809_vm1, %v2808_v3  ;;  %v2738_v43 = vld [vmem:[%s3281_s26] sm:$0xff]  }
 0x338   : > { %v1552_v61 = vpack.c.bf16 %v1548_v60, %v1548_v60  ;;  %2666 = vmatprep.subr.bf16.mxu1 %v2808_v3 }
 0x339   : > { %v2761_v42 = vpop.eup %2760 }
 0x33a   : > { %v1549_v62 = vmul.f32 %v2761_v42, %v2753_v47  ;;  %2651 = vmatmul.mubr.msk.bf16.vlgmr.msra.gmra.mrb[36].mxu0 %vm1505_vm10, %v1552_v61 }
 0x33b   : > { %2662 = vmatprep.mubr.msk.bf16.mxu0 %vm2809_vm1, %v2808_v3  ;;  %2661 = vmatpush3.bf16.msra.mxu0 %v2738_v43 }
 0x33c   : > { %v1553_v63 = vpack.c.bf16 %v1549_v62, %v1549_v62  ;;  %2672 = vmatprep.subr.bf16.mxu0 %v2808_v3 }
 0x33e   : > { %2657 = vmatmul.mubr.msk.bf16.vlgmr.msra.gmra.mrb[36].mxu1 %vm1505_vm10, %v1553_v63  ;;  %v2741_v63 = vld [vmem:[%s2936_s23 + $0x8] sm:$0xff]  }
 0x33f   : > { %2668 = vmatprep.mubr.msk.bf16.mxu1 %vm2809_vm1, %v2808_v3  ;;  %2667 = vmatpush3.bf16.msra.mxu1 %v2738_v43  ;;  %v2742_v43 = vld [vmem:[%s2946_s2] sm:$0xff]  }
 0x340   : > { %2678 = vmatprep.subr.bf16.mxu1 %v2808_v3 }
 0x405   : > { %v1599_v0 = vpop.f32.mrb[32].mxu0 }
 0x406   : > { %v1747_v2 = vpack.c.bf16 %v1599_v0, %v1599_v0  ;;  %v2640_v4 = vpop.f32.mrb[33].mxu0  ;;  %v2743_v0 = vld [vmem:[%s2946_s2 + $0x8] sm:$0xff]  }
 0x407   : > { %v1602_v7 = vpop.f32.mrb[34].mxu0 }
 0x408   : > { %v2641_v8 = vpop.f32.mrb[35].mxu0  ;;  %2663 = vmatmul.mubr.msk.bf16.vlgmr.msra.gmra.mrb[40].mxu0 %vm1280_vm3, %v1747_v2 }
 0x409   : > { %v1645_v9 = vpop.f32.mrb[32].mxu1  ;;  %2673 = vmatpush3.bf16.msra.mxu0 %v2739_v1  ;;  %2674 = vmatprep.mubr.msk.bf16.mxu0 %vm2809_vm1, %v2808_v3 }
 0x40a   : > { %v1748_v10 = vpack.c.bf16 %v1645_v9, %v1645_v9  ;;  %v2646_v11 = vpop.f32.mrb[33].mxu1  ;;  %2684 = vmatprep.subr.bf16.mxu0 %v2808_v3 }
 0x40b   : > { %v1648_v12 = vpop.f32.mrb[34].mxu1 }
 0x40c   : > { %v2647_v13 = vpop.f32.mrb[35].mxu1  ;;  %2669 = vmatmul.mubr.msk.bf16.vlgmr.msra.gmra.mrb[40].mxu1 %vm1280_vm3, %v1748_v10  ;;  %v2424_v12 = vld [vmem:[%s3283_s0] ss:$0 sm:$0xff] }
 0x40d   : > { %v1691_v14 = vpop.f32.mrb[36].mxu0  ;;  %2679 = vmatpush3.bf16.msra.mxu1 %v2739_v1  ;;  %2680 = vmatprep.mubr.msk.bf16.mxu1 %vm2809_vm1, %v2808_v3 }
 0x40e   : > { %v1749_v15 = vpack.c.bf16 %v1691_v14, %v1691_v14  ;;  %v2652_v16 = vpop.f32.mrb[37].mxu0  ;;  %2692 = vmatprep.subr.bf16.mxu1 %v2808_v3 }
 0x40f   : > { %v1694_v17 = vpop.f32.mrb[38].mxu0  ;;  %v2425_v16 = vld [vmem:[%s3284_s17] ss:$0 sm:$0xff] }
 0x410   : > { %v2653_v18 = vpop.f32.mrb[39].mxu0  ;;  %2675 = vmatmul.mubr.msk.bf16.vlgmr.msra.gmra.mrb[44].mxu0 %vm1280_vm3, %v1749_v15 }
 0x411   : > { %v1737_v19 = vpop.f32.mrb[36].mxu1  ;;  %2688 = vmatprep.mubr.msk.bf16.mxu0 %vm2809_vm1, %v2808_v3 }
 0x412   : > { %v1750_v20 = vpack.c.bf16 %v1737_v19, %v1737_v19  ;;  %v2658_v21 = vpop.f32.mrb[37].mxu1 }
 0x413   : > { %v1740_v22 = vpop.f32.mrb[38].mxu1  ;;  %v2744_v21 = vld [vmem:[%s2946_s2 + $0x10] sm:$0xff]  }
 0x414   : > { %v2659_v23 = vpop.f32.mrb[39].mxu1  ;;  %2681 = vmatmul.mubr.msk.bf16.vlgmr.msra.gmra.mrb[44].mxu1 %vm1280_vm3, %v1750_v20  ;;  %v2745_v22 = vld [vmem:[%s2946_s2 + $0x18] sm:$0xff]  }
 0x415   : > { %2700 = vmatprep.mubr.msk.bf16.mxu1 %vm2809_vm1, %v2808_v3  ;;  %2693 = vmatpush3.bf16.msra.mxu1 %v2742_v43  ;;  %v2426_v23 = vld [vmem:[%s614_s27] ss:$0 sm:$0xff] }
 0x416   : > { %2694 = vmatprep.subr.bf16.mxu1 %v2808_v3 }
 0x419   : > { %2695 = vmatpush3.bf16.msra.mxu1 %v2743_v0 }
 0x41a   : > { %2696 = vmatprep.subr.bf16.mxu1 %v2808_v3 }
 0x41d   : > { %2697 = vmatpush3.bf16.msra.mxu1 %v2744_v21 }
 0x41e   : > { %2698 = vmatprep.subr.bf16.mxu1 %v2808_v3 }
 0x421   : > { %2699 = vmatpush3.bf16.msra.mxu1 %v2745_v22 }
 0x4db   : > { %v1794_v24 = vpop.f32.mrb[40].mxu0 }
 0x4dc   : > { %v2664_v25 = vpop.f32.mrb[41].mxu0  ;;  %v1935_v33 = vsel %vm725_vm2, %v1794_v24, 0.0 }
 0x4dd   : > { %v1797_v26 = vpop.f32.mrb[42].mxu0 }
 0x4de   : > { %v2665_v27 = vpop.f32.mrb[43].mxu0 }
 0x4df   : > { %v1837_v28 = vpop.f32.mrb[40].mxu1 }
 0x4e0   : > { %v2670_v29 = vpop.f32.mrb[41].mxu1  ;;  %v1938_v44 = vsel %vm725_vm2, %v1837_v28, 0.0 }
 0x4e1   : > { %v1840_v30 = vpop.f32.mrb[42].mxu1 }
 0x4e2   : > { %v2671_v31 = vpop.f32.mrb[43].mxu1 }
 0x4e3   : > { %v1886_v32 = vpop.f32.mrb[44].mxu0 }
 0x4e4   : > { %v1936_v34 = vsel %vm725_vm2, %v1886_v32, 0.0  ;;  %v2676_v36 = vpop.f32.mrb[45].mxu0 }
 0x4e5   : > { %v1937_v37 = vadd.f32 %v1936_v34, %v1935_v33  ;;  %v1889_v38 = vpop.f32.mrb[46].mxu0 }
 0x4e6   : > { %v2677_v39 = vpop.f32.mrb[47].mxu0 }
 0x4e7   : > { %v1948_v40 = vadd.f32 %v2423_v35, %v1937_v37  ;;  %v1929_v41 = vpop.f32.mrb[44].mxu1 }
 0x4e8   : > { %v1939_v45 = vsel %vm725_vm2, %v1929_v41, 0.0  ;;  %v2682_v46 = vpop.f32.mrb[45].mxu1 }
 0x4e9   : > { %v1940_v47 = vadd.f32 %v1939_v45, %v1938_v44  ;;  %v1932_v48 = vpop.f32.mrb[46].mxu1  ;;  %v1950_v49 = vadd.f32 %v1948_v40, %v2971_v5 }
 0x4ea   : > { %v2683_v50 = vpop.f32.mrb[47].mxu1 }
 0x4eb   : > { %v1949_v51 = vadd.f32 %v2423_v35, %v1940_v47  ;;  %v1954_v52 = vsel %vm725_vm2, %v1950_v49, 0.0 }
 0x4ec   : > { %1955 = vadd.xlane.f32.xlu0 %v1954_v52 }
 0x4ed   : > { %v1951_v53 = vadd.f32 %v1949_v51, %v2973_v6  ;;  %v2740_v6 = vld [vmem:[%s2936_s23] sm:$0xff]  }
 0x4ee   : > { %2685 = vmatpush3.bf16.msra.mxu0 %v2740_v6  ;;  %v2437_v6 = vld [vmem:[%s628_s19] ss:$0 sm:$0xff] }
 0x4ef   : > { %v1957_v54 = vsel %vm725_vm2, %v1951_v53, 0.0  ;;  %2686 = vmatprep.subr.bf16.mxu0 %v2808_v3  ;;  %v2430_v3 = vld [vmem:[%s622_s4] ss:$0 sm:$0xff] }
 0x4f0   : > { %1958 = vadd.xlane.f32.xlu1 %v1957_v54 }
 0x4f2   : > { %2687 = vmatpush3.bf16.msra.mxu0 %v2741_v63 }
 0x579   : > { %v1956_v55 = vpop.xlane.xlu0 %1955 }
 0x57a   : > { %v1961_v56 = vmul.f32 0.03125, %v1956_v55 }
 0x57c   : > { %v1963_v57 = vsub.f32 %v1950_v49, %v1961_v56 }
 0x57d   : > { %v1959_v58 = vpop.xlane.xlu1 %1958 }
 0x57e   : > { %v1962_v59 = vmul.f32 0.03125, %v1959_v58  ;;  %v1965_v5 = vmul.f32 %v1963_v57, %v1963_v57 }
 0x580   : > { %v1964_v60 = vsub.f32 %v1951_v53, %v1962_v59  ;;  %v1967_v61 = vsel %vm725_vm2, %v1965_v5, 0.0 }
 0x581   : > { %1968 = vadd.xlane.f32.xlu0 %v1967_v61  ;;  %v2436_v61 = vld [vmem:[%s625_s22] ss:$0 sm:$0xff] }
 0x582   : > { %v1966_v42 = vmul.f32 %v1964_v60, %v1964_v60 }
 0x584   : > { %v1970_v62 = vsel %vm725_vm2, %v1966_v42, 0.0 }
 0x585   : > { %1971 = vadd.xlane.f32.xlu1 %v1970_v62 }
 0x60e   : > { %v1969_v1 = vpop.xlane.xlu0 %1968 }
 0x60f   : > { %v1973_v2 = vmul.f32 0.03125, %v1969_v1 }
 0x611   : > { %v1975_v4 = vadd.f32 1e-05, %v1973_v2 }
 0x612   : > { %v1972_v7 = vpop.xlane.xlu1 %1971 }
 0x613   : > { %2762 = vrsqrt.f32 %v1975_v4  ;;  %v1974_v8 = vmul.f32 0.03125, %v1972_v7 }
 0x615   : > { %v1976_v9 = vadd.f32 1e-05, %v1974_v8 }
 0x617   : > { %2764 = vrsqrt.f32 %v1976_v9 }
 0x61d   : > { %v2763_v10 = vpop.eup %2762 }
 0x61e   : > { %v1979_v11 = vmul.f32 %v2763_v10, %v1963_v57 }
 0x620   : > { %v1987_v14 = vmul.f32 %v2424_v12, %v1979_v11 }
 0x621   : > { %v2765_v13 = vpop.eup %2764 }
 0x622   : > { %v1980_v15 = vmul.f32 %v2765_v13, %v1964_v60  ;;  %v1995_v18 = vadd.f32 %v2425_v16, %v1987_v14 }
 0x624   : > { %v1988_v17 = vmul.f32 %v2424_v12, %v1980_v15 }
 0x626   : > { %v1996_v19 = vadd.f32 %v2425_v16, %v1988_v17 }
 0x628   : > { %v1997_v20 = vpack.c.bf16 %v1996_v19, %v1995_v18 }
 0x62a   : > { %2689 = vmatmul.mubr.msk.bf16.vlgmr.msra.gmra.mrb[48].mxu0 %vm725_vm2, %v1997_v20 }
 0x6fd   : > { %v2058_v24 = vpop.f32.mrb[48].mxu0 }
 0x6fe   : > { %v2059_v25 = vadd.f32 %v2426_v23, %v2058_v24  ;;  %v2690_v26 = vpop.f32.mrb[49].mxu0 }
 0x6ff   : > { %v2061_v27 = vpop.f32.mrb[50].mxu0 }
 0x700   : > { %v2062_v28 = vadd.f32 %v2426_v23, %v2061_v27  ;;  %v2691_v29 = vpop.f32.mrb[51].mxu0  ;;  %v2065_v30 = vmax.f32 %v2059_v25, 0.0 }
 0x702   : > { %v2066_v31 = vmax.f32 %v2062_v28, 0.0 }
 0x704   : > { %v2067_v32 = vpack.c.bf16 %v2066_v31, %v2065_v30 }
 0x706   : > { %2701 = vmatmul.mubr.msk.bf16.vlgmr.msra.gmra.mrb[48].mxu1 %vm2107_vm14, %v2067_v32 }
 0x7d9   : > { %v2145_v33 = vpop.f32.mrb[48].mxu1 }
 0x7da   : > { %v2146_v34 = vadd.f32 %v2430_v3, %v2145_v33  ;;  %v2702_v35 = vpop.f32.mrb[49].mxu1 }
 0x7db   : > { %v2148_v36 = vpop.f32.mrb[50].mxu1 }
 0x7dc   : > { %v2149_v37 = vadd.f32 %v2430_v3, %v2148_v36  ;;  %v2703_v38 = vpop.f32.mrb[51].mxu1  ;;  %v2152_v39 = vadd.f32 %v2146_v34, %v1995_v18 }
 0x7de   : > { %v2156_v40 = vsel %vm725_vm2, %v2152_v39, 0.0  ;;  %v2153_v41 = vadd.f32 %v2149_v37, %v1996_v19 }
 0x7df   : > { %2157 = vadd.xlane.f32.xlu0 %v2156_v40 }
 0x7e0   : > { %v2159_v44 = vsel %vm725_vm2, %v2153_v41, 0.0 }
 0x7e1   : > { %2160 = vadd.xlane.f32.xlu1 %v2159_v44 }
 0x86c   : > { %v2158_v45 = vpop.xlane.xlu0 %2157 }
 0x86d   : > { %v2162_v46 = vmul.f32 0.03125, %v2158_v45 }
 0x86e   : > { %v2161_v47 = vpop.xlane.xlu1 %2160 }
 0x86f   : > { %v2164_v48 = vsub.f32 %v2152_v39, %v2162_v46  ;;  %v2163_v49 = vmul.f32 0.03125, %v2161_v47 }
 0x871   : > { %v2165_v50 = vsub.f32 %v2153_v41, %v2163_v49  ;;  %v2166_v51 = vmul.f32 %v2164_v48, %v2164_v48 }
 0x873   : > { %v2168_v52 = vsel %vm725_vm2, %v2166_v51, 0.0  ;;  %v2167_v53 = vmul.f32 %v2165_v50, %v2165_v50 }
 0x874   : > { %2169 = vadd.xlane.f32.xlu0 %v2168_v52 }
 0x875   : > { %v2171_v54 = vsel %vm725_vm2, %v2167_v53, 0.0 }
 0x876   : > { %2172 = vadd.xlane.f32.xlu1 %v2171_v54 }
 0x901   : > { %v2170_v55 = vpop.xlane.xlu0 %2169 }
 0x902   : > { %v2174_v56 = vmul.f32 0.03125, %v2170_v55 }
 0x903   : > { %v2173_v57 = vpop.xlane.xlu1 %2172 }
 0x904   : > { %v2176_v58 = vadd.f32 1e-05, %v2174_v56  ;;  %v2175_v59 = vmul.f32 0.03125, %v2173_v57 }
 0x906   : > { %2766 = vrsqrt.f32 %v2176_v58  ;;  %v2177_v5 = vadd.f32 1e-05, %v2175_v59 }
 0x908   : > { %2768 = vrsqrt.f32 %v2177_v5 }
 0x910   : > { %v2767_v60 = vpop.eup %2766 }
 0x911   : > { %v2180_v42 = vmul.f32 %v2767_v60, %v2164_v48 }
 0x912   : > { %v2769_v62 = vpop.eup %2768 }
 0x913   : > { %v2188_v63 = vmul.f32 %v2436_v61, %v2180_v42  ;;  %v2181_v43 = vmul.f32 %v2769_v62, %v2165_v50  ;;  %2203 = sbr.rel (%p2438_p5) target bundleno = 2330 (0x91a), region = 84 }
 0x915   : > { %v2196_v0 = vadd.f32 %v2437_v6, %v2188_v63  ;;  %v2189_v1 = vmul.f32 %v2436_v61, %v2181_v43 }
 0x917   : > { %2198 = vst.msk [vmem:[#allocation2] sm:$0xff] %vm725_vm2, %v2196_v0  ;;  %v2197_v2 = vadd.f32 %v2437_v6, %v2189_v1  ;;  %2204 = vst.msk [vmem:[#allocation3] sm:$0xff] (!%p2438_p5), %vm725_vm2, %v2196_v0 }
 0x919   : > { %2199 = vst.msk [vmem:[#allocation2 + $0x8] sm:$0xff] %vm725_vm2, %v2197_v2  ;;  %2205 = vst.msk [vmem:[#allocation3 + $0x8] sm:$0xff] (!%p2438_p5), %vm725_vm2, %v2197_v2 }
 0x91a PF: > { %p2710_p6 = scmp.eq.s32.totalorder %s2895_s30, 1  ;;  %s2811_s15 = smov [#allocation3]  }
 0x91b   : > { %s2212_s19 = sshll.u32 %s2811_s15, 4  ;;  %s2213_s19 = int_to_ptr.vmem [resolvable:$true] %s2212_s19 }
 0x91c   : > { %s2770_s22 = scalar_lea.vmem %s2213_s19, 256  ;;  %p2777_p10 = scmp.lt.s32.totalorder %s2213_s19, %s2213_s19 }
 0x91d   : > { %p2771_p7 = scmp.ne.s32.totalorder %s2213_s19, %s2770_s22  ;;  %p2778_p11 = scmp.lt.s32.totalorder %s2770_s22, %s2770_s22 }
 0x91f   : > { %p2772_p8 = pnand %p2771_p7, %p2710_p6  ;;  %p2779_p12 = por %p2778_p11, %p2777_p10 }
 0x921   : > { %p2773_p9 = pneg %p2772_p8 }
 0x923   : > { %p2780_p13 = pnand %p2779_p12, %p2773_p9 }
 0x925   : > { %2783 = shalt.err (!%p2780_p13)
}
 0x926   : > { %s3285_s21 = sld [smem:[#allocation12_spill]] }
 0x92c   : > { %s2784_s0 = scalar_lea.hbm %s3285_s21, 256 }
 0x92d   : > { %p2785_p0 = scmp.ne.s32.totalorder %s3285_s21, %s2784_s0  ;;  %p2790_p3 = scmp.lt.u32.totalorder %s2784_s0, %s3285_s21 }
 0x92f   : > { %p2786_p1 = pnand %p2785_p0, %p2710_p6 }
 0x931   : > { %p2787_p2 = pneg %p2786_p1 }
 0x933   : > { %p2792_p4 = pnand %p2790_p3, %p2787_p2 }
 0x935   : > { %2795 = shalt.err (!%p2792_p4)
}
 0x936   : > { %s2812_s25 = smov 128   ;;  %s2813_s26 = smov 8  }
 0x937   : > { %2707 = dma.vmem_to_hbm [thread:$0]  (%p2710_p6), %s2213_s19, 256, %s3285_s21, [#allocation4], %s2812_s25, %s2812_s25, %s2813_s26  }
 0x938   : > { %2801 = dma.done.wait (%p2710_p6), [#allocation4], 256  }
 0x939   : > { %2803 = vsyncadd (%p2710_p6), [#allocation4], 4294967040 }
 0x93a PF: > { %s3286_s27 = sld [smem:[#allocation6_spill]] }
 0x940   : > { %s25_s29 = sadd.s32 1, %s3286_s27  }
 0x941   : > { %p22_p5 = scmp.ge.s32.totalorder %s25_s29, 4  }
 0x943   :  { %24 = sbr.rel (!%p22_p5) target bundleno = 7 (0x7), region = 144 }
 0x94a   :  { %2228 = vsyncpa [#allocation4], 1 }
 0x94b   :  { %2230 = vsyncpa [#allocation4 + $0x1], 1 }

</bundles_post_ra>
